<compile_context>
chip_gen: v7x
topology: tpu7x:2x2x1
jax: 0.10.0
libtpu: 0.0.40
codegen_flags: <defaults>
</compile_context>

<pallas_src>
from typing import NamedTuple

import jax
import jax.numpy as jnp
from jax.experimental import pallas as pl
from jax.experimental.pallas import tpu as pltpu


def _round_up(a: int, b: int) -> int:
    return (a + b - 1) // b * b


def _row_align(dtype) -> int:
    # sublane packing: 8 rows for 32-bit, 16 for bf16, 32 for int8/fp8
    return max(8, 32 // jnp.dtype(dtype).itemsize)


def _vmem_cap_bytes() -> int:
    try:
        info = pltpu.get_tpu_info()
        cap = getattr(info, "vmem_capacity_bytes", None)
        if cap:
            return int(cap)
    except Exception:
        pass
    return 64 << 20  # conservative fallback: v7x per-TC VMEM


# --------------------------------------------------------------------------- #
# Kernel
# --------------------------------------------------------------------------- #
def _swiglu_kernel(x_ref, wv_ref, o_ref, acc_ref):
    # x_ref   : (tm, tk)        tile of flattened input rows
    # wv_ref  : (tk, 2*tn)      fused [W.T | V.T] weight tile (single DMA / MXU stream)
    # o_ref   : (tm, tn)        output tile
    # acc_ref : (tm, 2*tn) f32  accumulator, resident across the K grid axis
    k = pl.program_id(2)
    partial = jnp.dot(x_ref[...], wv_ref[...], preferred_element_type=jnp.float32)

    @pl.when(k == 0)
    def _first():  # overwrite at k==0: no zero-init store + read-modify-write
        acc_ref[...] = partial

    @pl.when(k > 0)
    def _accumulate():
        acc_ref[...] += partial

    @pl.when(k == pl.num_programs(2) - 1)
    def _finalize():
        tn = o_ref.shape[-1]          # static, multiple of 128 -> vreg-clean slice
        xw = acc_ref[:, :tn]          # x @ W.T
        xv = acc_ref[:, tn:]          # x @ V.T
        # silu(xw) = xw * sigmoid(xw); exp and reciprocal both go to the EUP slot.
        silu = xw * pl.reciprocal(1.0 + jnp.exp(-xw), approx=True)
        o_ref[...] = (silu * xv).astype(o_ref.dtype)


# --------------------------------------------------------------------------- #
# Weight preparation (do ONCE, outside the hot path)
# --------------------------------------------------------------------------- #
class SwiGLUWeights(NamedTuple):
    wv: jax.Array   # (k_pad, 2*n_pad): per tn-tile interleaved [W.T tile | V.T tile]
    dim: int
    dim_ff: int
    k_pad: int
    n_pad: int
    tn: int         # N tile baked into the interleaved layout
    tk: int         # default K tile (k_pad is a multiple of it)


def prepare_swiglu_weights(w, v, *, tn=1024, tk=1024, compute_dtype=jnp.bfloat16):
    """Transpose + interleave + pad PyTorch-layout (dim_ff, dim) weights.

    Returns a SwiGLUWeights whose array has, for every N tile `t` of width tn:
      columns [t*2*tn, t*2*tn+tn)     = W.T columns [t*tn, (t+1)*tn)
      columns [t*2*tn+tn, (t+1)*2*tn) = V.T columns [t*tn, (t+1)*tn)
    so a single BlockSpec (tk, 2*tn) streams both gates in one contiguous DMA.
    Zero padding along K/N is numerically inert.
    """
    dim_ff, dim = w.shape
    assert v.shape == (dim_ff, dim), (v.shape, w.shape)
    tn = _round_up(tn, 128)
    tk = _round_up(tk, 128)
    tn_eff = min(tn, _round_up(dim_ff, 128))
    tk_eff = min(tk, _round_up(dim, 128))
    k_pad = _round_up(dim, tk_eff)
    n_pad = _round_up(dim_ff, tn_eff)

    wt = jnp.pad(w.T, ((0, k_pad - dim), (0, n_pad - dim_ff)))
    vt = jnp.pad(v.T, ((0, k_pad - dim), (0, n_pad - dim_ff)))
    n_tiles = n_pad // tn_eff
    wv = jnp.stack([wt.reshape(k_pad, n_tiles, tn_eff),
                    vt.reshape(k_pad, n_tiles, tn_eff)], axis=2)
    wv = wv.reshape(k_pad, 2 * n_pad)
    if compute_dtype is not None:
        wv = wv.astype(compute_dtype)
    return SwiGLUWeights(wv, dim, dim_ff, k_pad, n_pad, tn_eff, tk_eff)


# --------------------------------------------------------------------------- #
# Forward pass
# --------------------------------------------------------------------------- #
def fnn_swiglu_prepared(x, weights: SwiGLUWeights, *, tm=512, tk=None, out_dtype=None):
    """x: (..., dim); weights: result of prepare_swiglu_weights.

    tk=None picks the run-time K tile automatically (full K when it fits half
    the device VMEM, else the prepare-time tile); any explicit tk must divide
    weights.k_pad.
    """
    orig_shape = x.shape
    dim = orig_shape[-1]
    assert dim == weights.dim, (dim, weights.dim)
    out_dtype = out_dtype if out_dtype is not None else x.dtype

    wv = weights.wv
    k_pad, n_pad, tn = weights.k_pad, weights.n_pad, weights.tn

    x2d = x.reshape(-1, dim)
    if x2d.dtype != wv.dtype:
        x2d = x2d.astype(wv.dtype)      # bf16 MXU inputs; accumulation stays f32
    m = x2d.shape[0]

    align = _row_align(x2d.dtype)
    tm_eff = min(_round_up(tm, align), _round_up(m, align))
    m_pad = _round_up(m, tm_eff)

    in_bpe = jnp.dtype(x2d.dtype).itemsize
    w_bpe = jnp.dtype(wv.dtype).itemsize
    out_bpe = jnp.dtype(out_dtype).itemsize

    cap = _vmem_cap_bytes()

    def _budget(tk_r):
        return (2 * tm_eff * tk_r * in_bpe        # x double buffer
                + 2 * tk_r * 2 * tn * w_bpe       # fused weight double buffer
                + 2 * tm_eff * tn * out_bpe       # output double buffer
                + tm_eff * 2 * tn * 4)            # f32 accumulator scratch

    if tk is None:
        # Full-K reduction in one grid step when it fits comfortably: fewer
        # ~0.35 us grid steps and no accumulator RMW across K steps.
        tk_eff = k_pad if _budget(k_pad) <= cap // 2 else weights.tk
    else:
        tk_eff = _round_up(tk, 128)
    assert k_pad % tk_eff == 0, (k_pad, tk_eff)

    # Pad rows / K only when needed (avoid extra HBM passes in the hot path).
    if (m_pad, k_pad) != (m, dim):
        x2d = jnp.pad(x2d, ((0, m_pad - m), (0, k_pad - dim)))

    grid = (m_pad // tm_eff, n_pad // tn, k_pad // tk_eff)

    # Generation-aware VMEM limit: budget + headroom, capped at physical VMEM.
    vmem_limit = min(int(_budget(tk_eff) * 1.4) + (8 << 20), cap - (2 << 20))

    cost = pl.CostEstimate(
        flops=2 * m_pad * k_pad * (2 * n_pad),           # both matmuls
        transcendentals=2 * m_pad * n_pad,               # exp + reciprocal
        bytes_accessed=((n_pad // tn) * m_pad * k_pad * in_bpe          # x per N tile
                        + (m_pad // tm_eff) * k_pad * 2 * n_pad * w_bpe  # W per M tile
                        + m_pad * n_pad * out_bpe),
    )

    out = pl.pallas_call(
        _swiglu_kernel,
        out_shape=jax.ShapeDtypeStruct((m_pad, n_pad), out_dtype),
        grid_spec=pltpu.PrefetchScalarGridSpec(
            num_scalar_prefetch=0,
            grid=grid,
            in_specs=[
                pl.BlockSpec((tm_eff, tk_eff), lambda mi, ni, ki: (mi, ki)),   # x rows
                pl.BlockSpec((tk_eff, 2 * tn), lambda mi, ni, ki: (ki, ni)),   # [W.T | V.T]
            ],
            out_specs=pl.BlockSpec((tm_eff, tn), lambda mi, ni, ki: (mi, ni)),
            scratch_shapes=[
                pltpu.VMEM((tm_eff, 2 * tn), jnp.float32),   # fused f32 accumulator
            ],
        ),
        compiler_params=pltpu.CompilerParams(
            dimension_semantics=("parallel", "parallel", "arbitrary"),
            vmem_limit_bytes=vmem_limit,
        ),
        cost_estimate=cost,
    )(x2d, wv)

    if (m_pad, n_pad) != (m, weights.dim_ff):
        out = out[:m, :weights.dim_ff]
    return out.reshape(*orig_shape[:-1], weights.dim_ff)


def fnn_swiglu(x, w, v, *, tm=512, tn=1024, tk=1024,
               compute_dtype=jnp.bfloat16, out_dtype=None):
    """Convenience wrapper (prepares weights per call; prefer preparing once)."""
    weights = prepare_swiglu_weights(w, v, tn=tn, tk=tk, compute_dtype=compute_dtype)
    return fnn_swiglu_prepared(x, weights, tm=tm, out_dtype=out_dtype)


def _reference(x, w, v):
    xw = jnp.einsum("...d,fd->...f", x, w)
    xv = jnp.einsum("...d,fd->...f", x, v)
    return xw * jax.nn.sigmoid(xw) * xv


if __name__ == "__main__":
    # ---- Test 1: module-sized demo (single-tile grid, K/N padding + slicing) ----
    batch, seq, dim, dim_ff = 2, 8, 32, 64
    key = jax.random.PRNGKey(0)
    kx, kw, kv = jax.random.split(key, 3)
    x = jax.random.normal(kx, (batch, seq, dim), dtype=jnp.float32)
    # PyTorch nn.Linear weight layout (dim_ff, dim), kaiming-ish scale.
    w = jax.random.normal(kw, (dim_ff, dim), dtype=jnp.float32) * (1.0 / dim ** 0.5)
    v = jax.random.normal(kv, (dim_ff, dim), dtype=jnp.float32) * (1.0 / dim ** 0.5)

    weights = prepare_swiglu_weights(w, v)              # bf16 compute by default
    out = jax.block_until_ready(fnn_swiglu_prepared(x, weights))
    ref = _reference(x, w, v)
    assert out.shape == (batch, seq, dim_ff), out.shape
    assert out.dtype == x.dtype, out.dtype
    assert jnp.allclose(out, ref, atol=1e-1, rtol=5e-2), float(jnp.max(jnp.abs(out - ref)))

    # ---- Test 2: multi-tile smoke test (interleaved N layout, K accumulation,
    #      M padding + output slicing across a (3, 3, 2) grid) ----
    b2, s2, d2, f2 = 5, 8, 256, 384
    k1, k2, k3 = jax.random.split(jax.random.PRNGKey(1), 3)
    x2 = jax.random.normal(k1, (b2, s2, d2), dtype=jnp.float32)
    w2 = jax.random.normal(k2, (f2, d2), dtype=jnp.float32) * (1.0 / d2 ** 0.5)
    v2 = jax.random.normal(k3, (f2, d2), dtype=jnp.float32) * (1.0 / d2 ** 0.5)
    wt2 = prepare_swiglu_weights(w2, v2, tn=128, tk=128)
    out2 = jax.block_until_ready(fnn_swiglu_prepared(x2, wt2, tm=16, tk=128))
    ref2 = _reference(x2, w2, v2)
    assert out2.shape == (b2, s2, f2), out2.shape
    assert jnp.allclose(out2, ref2, atol=1e-1, rtol=5e-2), float(jnp.max(jnp.abs(out2 - ref2)))

    print("KERNEL_OK")
</pallas_src>

<mosaic_0001>
module attributes {stable_mosaic.version = 11 : i64} {
  func.func @_swiglu_kernel(%arg0: i32, %arg1: i32, %arg2: i32, %arg3: memref<16x128xbf16, #tpu.memory_space<vmem>>, %arg4: memref<128x256xbf16, #tpu.memory_space<vmem>>, %arg5: memref<16x128xf32, #tpu.memory_space<vmem>>, %arg6: memref<16x256xf32, #tpu.memory_space<vmem>>) attributes {dimension_semantics = [#tpu.dimension_semantics<parallel>, #tpu.dimension_semantics<parallel>, #tpu.dimension_semantics<arbitrary>], iteration_bounds = array<i64: 1, 1, 1>, scalar_prefetch = 0 : i64, scratch_operands = 1 : i64, tpu.core_type = #tpu.core_type<tc>, window_params = [{transform_indices = @transform_0, window_bounds = array<i64: 16, 128>}, {transform_indices = @transform_1, window_bounds = array<i64: 128, 256>}, {transform_indices = @transform_2, window_bounds = array<i64: 16, 128>}]} {
    %c0 = arith.constant 0 : index
    %c0_0 = arith.constant 0 : index
    %0 = vector.load %arg3[%c0, %c0_0] : memref<16x128xbf16, #tpu.memory_space<vmem>>, vector<16x128xbf16>
    %c0_1 = arith.constant 0 : index
    %c0_2 = arith.constant 0 : index
    %1 = vector.load %arg4[%c0_1, %c0_2] : memref<128x256xbf16, #tpu.memory_space<vmem>>, vector<128x256xbf16>
    %cst = arith.constant dense<0.000000e+00> : vector<16x256xf32>
    %2 = tpu.matmul %0, %1, %cst {dimension_numbers = #tpu.dot_dimension_numbers<[1], [0], [0], [1], [0, 0, 1, 1], [], []>} : vector<16x128xbf16>, vector<128x256xbf16>, vector<16x256xf32> -> vector<16x256xf32>
    %c0_i32 = arith.constant 0 : i32
    %3 = arith.cmpi eq, %arg2, %c0_i32 : i32
    %4 = arith.extui %3 : i1 to i32
    %c0_i32_3 = arith.constant 0 : i32
    %5 = arith.cmpi ne, %4, %c0_i32_3 : i32
    scf.if %5 {
      %c0_8 = arith.constant 0 : index
      %c0_9 = arith.constant 0 : index
      %12 = vector.load %arg6[%c0_8, %c0_9] : memref<16x256xf32, #tpu.memory_space<vmem>>, vector<16x256xf32>
      tpu.vector_store %arg6[%c0_8, %c0_9], %2 {strides = array<i32>} : memref<16x256xf32, #tpu.memory_space<vmem>>, vector<16x256xf32>,
    } else {
    }
    %c0_i32_4 = arith.constant 0 : i32
    %6 = arith.cmpi sgt, %arg2, %c0_i32_4 : i32
    %7 = arith.extui %6 : i1 to i32
    %c0_i32_5 = arith.constant 0 : i32
    %8 = arith.cmpi ne, %7, %c0_i32_5 : i32
    scf.if %8 {
      %c0_8 = arith.constant 0 : index
      %c0_9 = arith.constant 0 : index
      %12 = vector.load %arg6[%c0_8, %c0_9] : memref<16x256xf32, #tpu.memory_space<vmem>>, vector<16x256xf32>
      %13 = arith.addf %12, %2 : vector<16x256xf32>
      %c0_10 = arith.constant 0 : index
      %c0_11 = arith.constant 0 : index
      %14 = vector.load %arg6[%c0_10, %c0_11] : memref<16x256xf32, #tpu.memory_space<vmem>>, vector<16x256xf32>
      tpu.vector_store %arg6[%c0_10, %c0_11], %13 {strides = array<i32>} : memref<16x256xf32, #tpu.memory_space<vmem>>, vector<16x256xf32>,
    } else {
    }
    %c0_i32_6 = arith.constant 0 : i32
    %9 = arith.cmpi eq, %arg2, %c0_i32_6 : i32
    %10 = arith.extui %9 : i1 to i32
    %c0_i32_7 = arith.constant 0 : i32
    %11 = arith.cmpi ne, %10, %c0_i32_7 : i32
    scf.if %11 {
      %c0_8 = arith.constant 0 : index
      %c0_9 = arith.constant 0 : index
      %12 = vector.load %arg6[%c0_8, %c0_9] : memref<16x256xf32, #tpu.memory_space<vmem>>, vector<16x128xf32>
      %c0_10 = arith.constant 0 : index
      %c128 = arith.constant 128 : index
      %13 = vector.load %arg6[%c0_10, %c128] : memref<16x256xf32, #tpu.memory_space<vmem>>, vector<16x128xf32>
      %cst_11 = arith.constant 0.000000e+00 : f32
      %14 = vector.broadcast %cst_11 : f32 to vector<16x128xf32>
      %15 = arith.subf %14, %12 : vector<16x128xf32>
      %16 = math.exp %15 : vector<16x128xf32>
      %cst_12 = arith.constant 1.000000e+00 : f32
      %17 = vector.broadcast %cst_12 : f32 to vector<16x128xf32>
      %18 = arith.addf %17, %16 : vector<16x128xf32>
      %19 = tpu.reciprocal %18 {approx = true} : vector<16x128xf32> -> vector<16x128xf32>
      %20 = arith.mulf %12, %19 : vector<16x128xf32>
      %21 = arith.mulf %20, %13 : vector<16x128xf32>
      %c0_13 = arith.constant 0 : index
      %c0_14 = arith.constant 0 : index
      %22 = vector.load %arg5[%c0_13, %c0_14] : memref<16x128xf32, #tpu.memory_space<vmem>>, vector<16x128xf32>
      tpu.vector_store %arg5[%c0_13, %c0_14], %21 {strides = array<i32>} : memref<16x128xf32, #tpu.memory_space<vmem>>, vector<16x128xf32>,
    } else {
    }
    return
  }
  func.func @transform_0(%arg0: i32, %arg1: i32, %arg2: i32) -> (i32, i32) {
    %c0_i32 = arith.constant 0 : i32
    return %arg0, %arg2 : i32, i32
  }
  func.func @transform_1(%arg0: i32, %arg1: i32, %arg2: i32) -> (i32, i32) {
    %c0_i32 = arith.constant 0 : i32
    return %arg2, %arg1 : i32, i32
  }
  func.func @transform_2(%arg0: i32, %arg1: i32, %arg2: i32) -> (i32, i32) {
    %c0_i32 = arith.constant 0 : i32
    return %arg0, %arg1 : i32, i32
  }
}

</mosaic_0001>

<bundles_post_ra>
// kernel: tpu_custom_call.1
= control target key start
LH: loop header
LB: loop body
LE: loop exit
PB: predicated region body
PF: predicated region fallthrough
CT: control target
= control target key end

     0   :  { %7 = vsyncpa [#allocation4], 0  ;;  %s448_s0 = inlined_call_operand.hbm [shape: bf16[16,128], index: 0, kind: input, shape index: {}]   ;;  %s449_s1 = inlined_call_operand.hbm [shape: bf16[128,256], index: 1, kind: input, shape index: {}]   ;;  %s450_s2 = inlined_call_operand.hbm [shape: f32[16,128], index: 2, kind: output, shape index: {}]  }
   0x1   :  { %8 = vsyncpa [#allocation7], 0 }
   0x2   :  { %9 = vsyncpa [#allocation5], 0  ;;  %s383_s9 = smov [#allocation3]   ;;  %s311_s13 = scalar_lea.hbm %s448_s0, 128 }
   0x3   :  { %s15_s10 = sshll.u32 %s383_s9, 4  ;;  %p312_p0 = scmp.ne.s32.totalorder %s448_s0, %s311_s13  ;;  %s16_s10 = int_to_ptr.vmem [resolvable:$true] %s15_s10 }
   0x4   :  { %p315_p1 = scmp.lt.u32.totalorder %s311_s13, %s448_s0 }
   0x6   :  { %p317_p2 = pnand %p315_p1, %p312_p0 }
   0x8   :  { %320 = shalt.err (!%p317_p2)
}
   0x9   :  { %s321_s18 = scalar_lea.vmem %s16_s10, 128  ;;  %p326_p4 = scmp.lt.s32.totalorder %s16_s10, %s16_s10 }
   0xa   :  { %p322_p3 = scmp.ne.s32.totalorder %s16_s10, %s321_s18  ;;  %p327_p5 = scmp.lt.s32.totalorder %s321_s18, %s321_s18 }
   0xc   :  { %p328_p6 = por %p327_p5, %p326_p4 }
   0xe   :  { %p329_p7 = pnand %p328_p6, %p322_p3 }
  0x10   :  { %332 = shalt.err (!%p329_p7)
}
  0x11   :  { %s384_s19 = smov 64   ;;  %s385_s20 = smov 4  }
  0x12   :  { %21 = dma.hbm_to_vmem [thread:$0]  %s448_s0, 128, %s16_s10, [#allocation4], %s384_s19, %s384_s19, %s385_s20  }
  0x13   :  { %s386_s23 = smov [#allocation6]   ;;  %s333_s27 = scalar_lea.hbm %s449_s1, 2048 }
  0x14   :  { %s27_s24 = sshll.u32 %s386_s23, 4  ;;  %p334_p8 = scmp.ne.s32.totalorder %s449_s1, %s333_s27  ;;  %s28_s24 = int_to_ptr.vmem [resolvable:$true] %s27_s24 }
  0x15   :  { %p337_p9 = scmp.lt.u32.totalorder %s333_s27, %s449_s1 }
  0x17   :  { %p339_p10 = pnand %p337_p9, %p334_p8 }
  0x19   :  { %342 = shalt.err (!%p339_p10)
}
  0x1a   :  { %s343_s4 = scalar_lea.vmem %s28_s24, 2048  ;;  %p348_p12 = scmp.lt.s32.totalorder %s28_s24, %s28_s24 }
  0x1b   :  { %p344_p11 = scmp.ne.s32.totalorder %s28_s24, %s343_s4  ;;  %p349_p13 = scmp.lt.s32.totalorder %s343_s4, %s343_s4 }
  0x1d   :  { %p350_p0 = por %p349_p13, %p348_p12 }
  0x1f   :  { %p351_p1 = pnand %p350_p0, %p344_p11 }
  0x21   :  { %354 = shalt.err (!%p351_p1)
}
  0x22   :  { %s387_s0 = smov 128   ;;  %s388_s5 = smov 8  }
  0x23   :  { %33 = dma.hbm_to_vmem [thread:$0]  %s449_s1, 2048, %s28_s24, [#allocation7], %s387_s0, %s387_s0, %s388_s5  }
  0x24   :  { %377 = dma.done.wait [#allocation4], 128  }
  0x25   :  { %378 = vsyncadd [#allocation4], 4294967168 }
  0x26   :  { %379 = dma.done.wait [#allocation7], 2048  }
  0x27   :  { %380 = vsyncadd [#allocation7], 4294965248  ;;  %v389_v0 = vmov 0   ;;  %v278_v1 = vld [vmem:[#allocation6 + $0x4] ss:$8 sps:$4 sm:$0xff]   ;;  %v302_v17 = vld [vmem:[#allocation3] sm:$0xff]  }
  0x28   :  { %177 = vmatprep.mubr.bf16.mxu0 %v389_v0  ;;  %v280_v2 = vld [vmem:[#allocation6] ss:$8 sps:$4 sm:$0xff]   ;;  %145 = vmatprep.subr.bf16.mxu0 %v278_v1  ;;  %v281_v3 = vld [vmem:[#allocation6 + $0x14] ss:$8 sps:$4 sm:$0xff]   ;;  %v283_v4 = vld [vmem:[#allocation6 + $0x10] ss:$8 sps:$4 sm:$0xff]  }
  0x29   :  { %146 = vmatpush1.bf16.msra.mxu0 %v280_v2  ;;  %v284_v5 = vld [vmem:[#allocation6 + $0x24] ss:$8 sps:$4 sm:$0xff]   ;;  %v286_v6 = vld [vmem:[#allocation6 + $0x20] ss:$8 sps:$4 sm:$0xff]   ;;  %v287_v7 = vld [vmem:[#allocation6 + $0x34] ss:$8 sps:$4 sm:$0xff]  }
  0x2a   :  { %147 = vmatprep.subr.bf16.mxu0 %v281_v3  ;;  %v289_v8 = vld [vmem:[#allocation6 + $0x30] ss:$8 sps:$4 sm:$0xff]   ;;  %v290_v9 = vld [vmem:[#allocation6 + $0x44] ss:$8 sps:$4 sm:$0xff]   ;;  %v292_v10 = vld [vmem:[#allocation6 + $0x40] ss:$8 sps:$4 sm:$0xff]  }
  0x2b   :  { %v293_v11 = vld [vmem:[#allocation6 + $0x54] ss:$8 sps:$4 sm:$0xff]   ;;  %v295_v12 = vld [vmem:[#allocation6 + $0x50] ss:$8 sps:$4 sm:$0xff]   ;;  %v296_v13 = vld [vmem:[#allocation6 + $0x64] ss:$8 sps:$4 sm:$0xff]  }
  0x2c   :  { %v298_v14 = vld [vmem:[#allocation6 + $0x60] ss:$8 sps:$4 sm:$0xff]   ;;  %v299_v15 = vld [vmem:[#allocation6 + $0x74] ss:$8 sps:$4 sm:$0xff]   ;;  %v301_v16 = vld [vmem:[#allocation6 + $0x70] ss:$8 sps:$4 sm:$0xff]  }
  0x2d   :  { %148 = vmatpush1.bf16.msra.mxu0 %v283_v4  ;;  %s390_s1 = smov [#allocation8]  }
  0x2e   :  { %149 = vmatprep.subr.bf16.mxu0 %v284_v5  ;;  %s240_s8 = sshll.u32 %s390_s1, 4  ;;  %s241_s8 = int_to_ptr.vmem [resolvable:$true] %s240_s8 }
  0x2f   :  { %s355_s9 = scalar_lea.vmem %s241_s8, 256  ;;  %p360_p3 = scmp.lt.s32.totalorder %s241_s8, %s241_s8 }
  0x30   :  { %p356_p2 = scmp.ne.s32.totalorder %s241_s8, %s355_s9  ;;  %p361_p4 = scmp.lt.s32.totalorder %s355_s9, %s355_s9 }
  0x31   :  { %150 = vmatpush1.bf16.msra.mxu0 %v286_v6 }
  0x32   :  { %151 = vmatprep.subr.bf16.mxu0 %v287_v7  ;;  %p362_p5 = por %p361_p4, %p360_p3 }
  0x34   :  { %p363_p6 = pnand %p362_p5, %p356_p2 }
  0x35   :  { %152 = vmatpush1.bf16.msra.mxu0 %v289_v8 }
  0x36   :  { %153 = vmatprep.subr.bf16.mxu0 %v290_v9 }
  0x39   :  { %154 = vmatpush1.bf16.msra.mxu0 %v292_v10 }
  0x3a   :  { %155 = vmatprep.subr.bf16.mxu0 %v293_v11 }
  0x3d   :  { %156 = vmatpush1.bf16.msra.mxu0 %v295_v12 }
  0x3e   :  { %157 = vmatprep.subr.bf16.mxu0 %v296_v13 }
  0x41   :  { %158 = vmatpush1.bf16.msra.mxu0 %v298_v14 }
  0x42   :  { %159 = vmatprep.subr.bf16.mxu0 %v299_v15 }
  0x45   :  { %160 = vmatpush1.bf16.msra.mxu0 %v301_v16 }
  0x48   :  { %178 = vmatmul.mubr.bf16.vlgmr.msra.gmra.mrb[0].mxu0 %v302_v17 }
 0x11b   :  { %v179_v18 = vpop.f32.mrb[0].mxu0 }
 0x11c   :  { %v219_v19 = vsub.f32 0.0, %v179_v18  ;;  %v181_v20 = vpop.f32.mrb[1].mxu0 }
 0x11d   :  { %v183_v21 = vpop.f32.mrb[2].mxu0 }
 0x11e   :  { %v221_v22 = vmul.f32 1.442695, %v219_v19  ;;  %v220_v23 = vsub.f32 0.0, %v183_v21  ;;  %v185_v24 = vpop.f32.mrb[3].mxu0 }
 0x120   :  { %303 = vpow2.f32 %v221_v22  ;;  %v223_v25 = vmul.f32 1.442695, %v220_v23 }
 0x122   :  { %305 = vpow2.f32 %v223_v25 }
 0x12a   :  { %v304_v26 = vpop.eup %303 }
 0x12b   :  { %v225_v27 = vadd.f32 1.0, %v304_v26 }
 0x12c   :  { %v306_v28 = vpop.eup %305 }
 0x12d   :  { %307 = vrcp.f32 %v225_v27  ;;  %v226_v29 = vadd.f32 1.0, %v306_v28 }
 0x12f   :  { %309 = vrcp.f32 %v226_v29 }
 0x137   :  { %v308_v30 = vpop.eup %307 }
 0x138   :  { %v229_v31 = vmul.f32 %v308_v30, %v179_v18 }
 0x139   :  { %v310_v32 = vpop.eup %309 }
 0x13a   :  { %v231_v33 = vmul.f32 %v229_v31, %v181_v20  ;;  %v230_v34 = vmul.f32 %v310_v32, %v183_v21 }
 0x13c   :  { %233 = vst [vmem:[#allocation8] sm:$0xff] %v231_v33  ;;  %v232_v35 = vmul.f32 %v230_v34, %v185_v24 }
 0x13e   :  { %234 = vst [vmem:[#allocation8 + $0x8] sm:$0xff] %v232_v35 }
 0x13f   :  { %366 = shalt.err (!%p363_p6)
}
 0x140   :  { %s367_s12 = scalar_lea.hbm %s450_s2, 256 }
 0x141   :  { %p368_p7 = scmp.ne.s32.totalorder %s450_s2, %s367_s12  ;;  %p371_p8 = scmp.lt.u32.totalorder %s367_s12, %s450_s2 }
 0x143   :  { %p373_p9 = pnand %p371_p8, %p368_p7 }
 0x145   :  { %376 = shalt.err (!%p373_p9)
}
 0x146   :  { %246 = dma.vmem_to_hbm [thread:$0]  %s241_s8, 256, %s450_s2, [#allocation5], %s387_s0, %s387_s0, %s388_s5  }
 0x147   :  { %381 = dma.done.wait [#allocation5], 256  }
 0x148   :  { %382 = vsyncadd [#allocation5], 4294967040 }
 0x149   :  { %250 = vsyncpa [#allocation4], 1 }
 0x14a   :  { %251 = vsyncpa [#allocation7], 1 }
 0x14b   :  { %252 = vsyncpa [#allocation5], 1 }

</bundles_post_ra>
